<compile_context>
chip_gen: v5e
topology: v5e:2x2
jax: 0.10.0
libtpu: 0.0.40
codegen_flags: <defaults>
</compile_context>

<pallas_src>
import jax
import jax.numpy as jnp
from jax import lax
from jax.experimental import pallas as pl
from jax.experimental.pallas import tpu as pltpu

K_ITERS = 10          # APPNP K
ALPHA = 0.1           # cfg.gnn.ppr
RESIDUAL = True
BN_EPS = 1e-5
LANE = 128
SUBLANE = 8


def _round_up(v, m):
    return ((v + m - 1) // m) * m


def appnp_layer_kernel(x_ref, adj_ref, w1_ref, shift1_ref, w2_ref, b2_ref, o_ref):
    x = x_ref[...]                                            # [Np, Fp] f32

    # ---- MLP encoder: Linear -> BatchNorm(eval) -> ReLU -> Linear
    # BatchNorm scale and the first bias are pre-folded into w1_ref / shift1_ref (wrapper).
    h = jnp.dot(x, w1_ref[...], preferred_element_type=jnp.float32) + shift1_ref[...]
    h = jnp.maximum(h, 0.0)                                   # ReLU (MLP hidden act)
    # TODO(synk): MLP hidden dropout is identity in eval mode (training-mode not modeled).
    h = jnp.dot(h, w2_ref[...], preferred_element_type=jnp.float32) + b2_ref[...]   # [Np, Fp]

    # ---- APPNP propagation. adj_ref already holds (1-alpha) * A_hat, in bf16.
    adj = adj_ref[...]                                        # [Np, Np] bf16
    ah = ALPHA * h                                            # hoisted out of the K loop

    def body(_, z):
        # bf16 MXU operands, f32 accumulation.
        return jnp.dot(adj, z.astype(jnp.bfloat16),
                       preferred_element_type=jnp.float32) + ah

    z = lax.fori_loop(0, K_ITERS, body, h, unroll=True)       # fixed K=10 -> fully unrolled

    # ---- self.act = ReLU (+ Dropout == identity at eval), then residual.
    out = jnp.maximum(z, 0.0)
    if RESIDUAL:
        out = x + out
    o_ref[...] = out


def build_gcn_adj(edge_index, num_nodes):
    """Dense A_hat = D^{-1/2} (A + I) D^{-1/2}, matching PyG gcn_norm add-semantics."""
    src = edge_index[0]
    dst = edge_index[1]
    a = jnp.zeros((num_nodes, num_nodes), jnp.float32)
    a = a.at[dst, src].add(1.0)                               # A[i, j] = #edges j -> i
    a = a + jnp.eye(num_nodes, dtype=jnp.float32)             # add self loops
    deg = a.sum(axis=1)                                       # in-degree (incl. self loop)
    d_inv_sqrt = jnp.where(deg > 0, lax.rsqrt(deg), 0.0)
    return d_inv_sqrt[:, None] * a * d_inv_sqrt[None, :]


def appnp_layer(x, edge_index, params):
    n, dim_in = x.shape
    dim_out = params["w2"].shape[1]
    if RESIDUAL:
        assert dim_in == dim_out, "residual requires dim_in == dim_out"

    n_pad = _round_up(n, SUBLANE)
    fi = _round_up(dim_in, LANE)
    fo = _round_up(dim_out, LANE)

    # ---- graph preprocessing (wrapper-side XLA): fold (1-alpha) into A_hat, cast to bf16.
    adj = build_gcn_adj(edge_index, n)
    adj = jnp.pad((1.0 - ALPHA) * adj,
                  ((0, n_pad - n), (0, n_pad - n))).astype(jnp.bfloat16)

    # ---- fold eval-mode BatchNorm1d and the first Linear bias into w1 / a single shift.
    bn_scale = params["bn_gamma"] * lax.rsqrt(params["bn_var"] + BN_EPS)
    bn_shift = params["bn_beta"] - params["bn_mean"] * bn_scale
    w1 = params["w1"] * bn_scale[None, :]
    shift1 = params["b1"] * bn_scale + bn_shift

    # ---- zero-pad everything to lane-dense shapes (last dim multiple of 128).
    x_p = jnp.pad(x, ((0, n_pad - n), (0, fi - dim_in)))
    w1_p = jnp.pad(w1, ((0, fi - dim_in), (0, fi - dim_in)))
    shift1_p = jnp.pad(shift1, (0, fi - dim_in)).reshape(1, fi)
    w2_p = jnp.pad(params["w2"], ((0, fi - dim_in), (0, fo - dim_out)))
    b2_p = jnp.pad(params["b2"], (0, fo - dim_out)).reshape(1, fo)

    args = (x_p, adj, w1_p, shift1_p, w2_p, b2_p)

    # Size the scoped VMEM limit from the actual resident footprint (capped at v7x's 64 MiB).
    in_bytes = sum(a.size * a.dtype.itemsize for a in args)
    out_bytes = n_pad * fo * 4
    vmem_limit = int(min(64 * 1024 * 1024,
                         max(16 * 1024 * 1024, 2 * (in_bytes + out_bytes) + (4 << 20))))

    flops = (2 * n_pad * fi * fi                    # encoder Linear 1
             + 2 * n_pad * fi * fo                  # encoder Linear 2
             + K_ITERS * 2 * n_pad * n_pad * fo)    # K propagation matmuls
    cost = pl.CostEstimate(flops=flops, transcendentals=0,
                           bytes_accessed=in_bytes + out_bytes)

    out = pl.pallas_call(
        appnp_layer_kernel,
        out_shape=jax.ShapeDtypeStruct((n_pad, fo), jnp.float32),
        in_specs=[pl.BlockSpec(memory_space=pltpu.MemorySpace.VMEM)] * len(args),
        out_specs=pl.BlockSpec(memory_space=pltpu.MemorySpace.VMEM),
        compiler_params=pltpu.CompilerParams(vmem_limit_bytes=vmem_limit),
        cost_estimate=cost,
    )(*args)

    return out[:n, :dim_out]


def appnp_layer_ref(x, edge_index, params):
    """Pure-JAX f32 reference (matches the PyTorch eval-mode forward)."""
    adj = build_gcn_adj(edge_index, x.shape[0])
    bn_scale = params["bn_gamma"] * lax.rsqrt(params["bn_var"] + BN_EPS)
    bn_shift = params["bn_beta"] - params["bn_mean"] * bn_scale
    h = x @ params["w1"] + params["b1"]
    h = h * bn_scale + bn_shift
    h = jnp.maximum(h, 0.0)
    h = h @ params["w2"] + params["b2"]
    z = h
    for _ in range(K_ITERS):
        z = (1.0 - ALPHA) * (adj @ z) + ALPHA * h
    out = jnp.maximum(z, 0.0)
    return x + out if RESIDUAL else out


def init_params(key, dim_in, dim_out):
    k1, k2 = jax.random.split(key)
    return {
        "w1": 0.1 * jax.random.normal(k1, (dim_in, dim_in), jnp.float32),
        "b1": jnp.zeros((dim_in,), jnp.float32),
        "bn_gamma": jnp.ones((dim_in,), jnp.float32),
        "bn_beta": jnp.zeros((dim_in,), jnp.float32),
        "bn_mean": jnp.zeros((dim_in,), jnp.float32),
        "bn_var": jnp.ones((dim_in,), jnp.float32),
        "w2": 0.1 * jax.random.normal(k2, (dim_in, dim_out), jnp.float32),
        "b2": jnp.zeros((dim_out,), jnp.float32),
    }


if __name__ == "__main__":
    N, DIM_IN, DIM_OUT, E = 64, 32, 32, 128   # residual requires dim_in == dim_out

    key = jax.random.PRNGKey(0)
    kx, ke, kp = jax.random.split(key, 3)

    x = jax.random.normal(kx, (N, DIM_IN), jnp.float32)

    # Random undirected edge list (2, 2E): sample E pairs and add reversed copies.
    src = jax.random.randint(ke, (E,), 0, N, dtype=jnp.int32)
    dst = (src + 1 + jax.random.randint(jax.random.fold_in(ke, 1), (E,), 0, N - 1,
                                        dtype=jnp.int32)) % N   # avoid self loops
    edge_index = jnp.stack([jnp.concatenate([src, dst]),
                            jnp.concatenate([dst, src])], axis=0)

    params = init_params(kp, DIM_IN, DIM_OUT)

    out = appnp_layer(x, edge_index, params)
    jax.block_until_ready(out)
    assert out.shape == (N, DIM_OUT) and out.dtype == jnp.float32

    # Validate bf16-propagation kernel against the f32 reference (loose tol for bf16 rounding).
    ref = appnp_layer_ref(x, edge_index, params)
    err = float(jnp.max(jnp.abs(out - ref)))
    assert err < 5e-2, f"max |err| = {err}"

    print("KERNEL_OK")
</pallas_src>

<mosaic_0001>
module attributes {stable_mosaic.version = 11 : i64} {
  func.func @appnp_layer_kernel(%arg0: memref<64x128xf32, #tpu.memory_space<vmem>>, %arg1: memref<64x64xbf16, #tpu.memory_space<vmem>>, %arg2: memref<128x128xf32, #tpu.memory_space<vmem>>, %arg3: memref<1x128xf32, #tpu.memory_space<vmem>>, %arg4: memref<128x128xf32, #tpu.memory_space<vmem>>, %arg5: memref<1x128xf32, #tpu.memory_space<vmem>>, %arg6: memref<64x128xf32, #tpu.memory_space<vmem>>) attributes {dimension_semantics = [], scalar_prefetch = 0 : i64, scratch_operands = 0 : i64, tpu.core_type = #tpu.core_type<tc>} {
    %c0 = arith.constant 0 : index
    %c0_0 = arith.constant 0 : index
    %0 = vector.load %arg0[%c0, %c0_0] : memref<64x128xf32, #tpu.memory_space<vmem>>, vector<64x128xf32>
    %c0_1 = arith.constant 0 : index
    %c0_2 = arith.constant 0 : index
    %1 = vector.load %arg2[%c0_1, %c0_2] : memref<128x128xf32, #tpu.memory_space<vmem>>, vector<128x128xf32>
    %cst = arith.constant dense<0.000000e+00> : vector<64x128xf32>
    %2 = tpu.matmul %0, %1, %cst {dimension_numbers = #tpu.dot_dimension_numbers<[1], [0], [0], [1], [0, 0, 1, 1], [], []>} : vector<64x128xf32>, vector<128x128xf32>, vector<64x128xf32> -> vector<64x128xf32>
    %c0_3 = arith.constant 0 : index
    %c0_4 = arith.constant 0 : index
    %3 = vector.load %arg3[%c0_3, %c0_4] : memref<1x128xf32, #tpu.memory_space<vmem>>, vector<1x128xf32>
    %4 = vector.broadcast %3 : vector<1x128xf32> to vector<64x128xf32>
    %5 = arith.addf %2, %4 : vector<64x128xf32>
    %cst_5 = arith.constant 0.000000e+00 : f32
    %6 = vector.broadcast %cst_5 : f32 to vector<64x128xf32>
    %7 = arith.maximumf %5, %6 : vector<64x128xf32>
    %c0_6 = arith.constant 0 : index
    %c0_7 = arith.constant 0 : index
    %8 = vector.load %arg4[%c0_6, %c0_7] : memref<128x128xf32, #tpu.memory_space<vmem>>, vector<128x128xf32>
    %cst_8 = arith.constant dense<0.000000e+00> : vector<64x128xf32>
    %9 = tpu.matmul %7, %8, %cst_8 {dimension_numbers = #tpu.dot_dimension_numbers<[1], [0], [0], [1], [0, 0, 1, 1], [], []>} : vector<64x128xf32>, vector<128x128xf32>, vector<64x128xf32> -> vector<64x128xf32>
    %c0_9 = arith.constant 0 : index
    %c0_10 = arith.constant 0 : index
    %10 = vector.load %arg5[%c0_9, %c0_10] : memref<1x128xf32, #tpu.memory_space<vmem>>, vector<1x128xf32>
    %11 = vector.broadcast %10 : vector<1x128xf32> to vector<64x128xf32>
    %12 = arith.addf %9, %11 : vector<64x128xf32>
    %c0_11 = arith.constant 0 : index
    %c0_12 = arith.constant 0 : index
    %13 = vector.load %arg1[%c0_11, %c0_12] : memref<64x64xbf16, #tpu.memory_space<vmem>>, vector<64x64xbf16>
    %cst_13 = arith.constant 1.000000e-01 : f32
    %14 = vector.broadcast %cst_13 : f32 to vector<64x128xf32>
    %15 = arith.mulf %14, %12 : vector<64x128xf32>
    %c0_i32 = arith.constant 0 : i32
    %16 = arith.truncf %12 : vector<64x128xf32> to vector<64x128xbf16>
    %cst_14 = arith.constant dense<0.000000e+00> : vector<64x128xf32>
    %17 = tpu.matmul %13, %16, %cst_14 {dimension_numbers = #tpu.dot_dimension_numbers<[1], [0], [0], [1], [0, 0, 1, 1], [], []>} : vector<64x64xbf16>, vector<64x128xbf16>, vector<64x128xf32> -> vector<64x128xf32>
    %18 = arith.addf %17, %15 : vector<64x128xf32>
    %c1_i32 = arith.constant 1 : i32
    %19 = arith.truncf %18 : vector<64x128xf32> to vector<64x128xbf16>
    %cst_15 = arith.constant dense<0.000000e+00> : vector<64x128xf32>
    %20 = tpu.matmul %13, %19, %cst_15 {dimension_numbers = #tpu.dot_dimension_numbers<[1], [0], [0], [1], [0, 0, 1, 1], [], []>} : vector<64x64xbf16>, vector<64x128xbf16>, vector<64x128xf32> -> vector<64x128xf32>
    %21 = arith.addf %20, %15 : vector<64x128xf32>
    %c2_i32 = arith.constant 2 : i32
    %22 = arith.truncf %21 : vector<64x128xf32> to vector<64x128xbf16>
    %cst_16 = arith.constant dense<0.000000e+00> : vector<64x128xf32>
    %23 = tpu.matmul %13, %22, %cst_16 {dimension_numbers = #tpu.dot_dimension_numbers<[1], [0], [0], [1], [0, 0, 1, 1], [], []>} : vector<64x64xbf16>, vector<64x128xbf16>, vector<64x128xf32> -> vector<64x128xf32>
    %24 = arith.addf %23, %15 : vector<64x128xf32>
    %c3_i32 = arith.constant 3 : i32
    %25 = arith.truncf %24 : vector<64x128xf32> to vector<64x128xbf16>
    %cst_17 = arith.constant dense<0.000000e+00> : vector<64x128xf32>
    %26 = tpu.matmul %13, %25, %cst_17 {dimension_numbers = #tpu.dot_dimension_numbers<[1], [0], [0], [1], [0, 0, 1, 1], [], []>} : vector<64x64xbf16>, vector<64x128xbf16>, vector<64x128xf32> -> vector<64x128xf32>
    %27 = arith.addf %26, %15 : vector<64x128xf32>
    %c4_i32 = arith.constant 4 : i32
    %28 = arith.truncf %27 : vector<64x128xf32> to vector<64x128xbf16>
    %cst_18 = arith.constant dense<0.000000e+00> : vector<64x128xf32>
    %29 = tpu.matmul %13, %28, %cst_18 {dimension_numbers = #tpu.dot_dimension_numbers<[1], [0], [0], [1], [0, 0, 1, 1], [], []>} : vector<64x64xbf16>, vector<64x128xbf16>, vector<64x128xf32> -> vector<64x128xf32>
    %30 = arith.addf %29, %15 : vector<64x128xf32>
    %c5_i32 = arith.constant 5 : i32
    %31 = arith.truncf %30 : vector<64x128xf32> to vector<64x128xbf16>
    %cst_19 = arith.constant dense<0.000000e+00> : vector<64x128xf32>
    %32 = tpu.matmul %13, %31, %cst_19 {dimension_numbers = #tpu.dot_dimension_numbers<[1], [0], [0], [1], [0, 0, 1, 1], [], []>} : vector<64x64xbf16>, vector<64x128xbf16>, vector<64x128xf32> -> vector<64x128xf32>
    %33 = arith.addf %32, %15 : vector<64x128xf32>
    %c6_i32 = arith.constant 6 : i32
    %34 = arith.truncf %33 : vector<64x128xf32> to vector<64x128xbf16>
    %cst_20 = arith.constant dense<0.000000e+00> : vector<64x128xf32>
    %35 = tpu.matmul %13, %34, %cst_20 {dimension_numbers = #tpu.dot_dimension_numbers<[1], [0], [0], [1], [0, 0, 1, 1], [], []>} : vector<64x64xbf16>, vector<64x128xbf16>, vector<64x128xf32> -> vector<64x128xf32>
    %36 = arith.addf %35, %15 : vector<64x128xf32>
    %c7_i32 = arith.constant 7 : i32
    %37 = arith.truncf %36 : vector<64x128xf32> to vector<64x128xbf16>
    %cst_21 = arith.constant dense<0.000000e+00> : vector<64x128xf32>
    %38 = tpu.matmul %13, %37, %cst_21 {dimension_numbers = #tpu.dot_dimension_numbers<[1], [0], [0], [1], [0, 0, 1, 1], [], []>} : vector<64x64xbf16>, vector<64x128xbf16>, vector<64x128xf32> -> vector<64x128xf32>
    %39 = arith.addf %38, %15 : vector<64x128xf32>
    %c8_i32 = arith.constant 8 : i32
    %40 = arith.truncf %39 : vector<64x128xf32> to vector<64x128xbf16>
    %cst_22 = arith.constant dense<0.000000e+00> : vector<64x128xf32>
    %41 = tpu.matmul %13, %40, %cst_22 {dimension_numbers = #tpu.dot_dimension_numbers<[1], [0], [0], [1], [0, 0, 1, 1], [], []>} : vector<64x64xbf16>, vector<64x128xbf16>, vector<64x128xf32> -> vector<64x128xf32>
    %42 = arith.addf %41, %15 : vector<64x128xf32>
    %c9_i32 = arith.constant 9 : i32
    %43 = arith.truncf %42 : vector<64x128xf32> to vector<64x128xbf16>
    %cst_23 = arith.constant dense<0.000000e+00> : vector<64x128xf32>
    %44 = tpu.matmul %13, %43, %cst_23 {dimension_numbers = #tpu.dot_dimension_numbers<[1], [0], [0], [1], [0, 0, 1, 1], [], []>} : vector<64x64xbf16>, vector<64x128xbf16>, vector<64x128xf32> -> vector<64x128xf32>
    %45 = arith.addf %44, %15 : vector<64x128xf32>
    %cst_24 = arith.constant 0.000000e+00 : f32
    %46 = vector.broadcast %cst_24 : f32 to vector<64x128xf32>
    %47 = arith.maximumf %45, %46 : vector<64x128xf32>
    %48 = arith.addf %0, %47 : vector<64x128xf32>
    %c0_25 = arith.constant 0 : index
    %c0_26 = arith.constant 0 : index
    %49 = vector.load %arg6[%c0_25, %c0_26] : memref<64x128xf32, #tpu.memory_space<vmem>>, vector<64x128xf32>
    tpu.vector_store %arg6[%c0_25, %c0_26], %48 {strides = array<i32>} : memref<64x128xf32, #tpu.memory_space<vmem>>, vector<64x128xf32>,
    return
  }
}

</mosaic_0001>

<bundles_post_ra>
// kernel: tpu_custom_call.1
= control target key start
LH: loop header
LB: loop body
LE: loop exit
PB: predicated region body
PF: predicated region fallthrough
CT: control target
= control target key end

     0   :  { %11 = vsyncpa [#allocation3], 0  ;;  %s1142_s0 = inlined_call_operand.hbm [shape: f32[64,128], index: 0, kind: input, shape index: {}]   ;;  %s1143_s1 = inlined_call_operand.hbm [shape: bf16[64,64], index: 1, kind: input, shape index: {}]   ;;  %s1144_s2 = inlined_call_operand.hbm [shape: f32[128,128], index: 2, kind: input, shape index: {}]   ;;  %s1145_s3 = inlined_call_operand.vmem [shape: f32[1,128], index: 3, kind: input, shape index: {}]   ;;  %s1146_s4 = inlined_call_operand.hbm [shape: f32[128,128], index: 4, kind: input, shape index: {}]   ;;  %s1147_s5 = inlined_call_operand.vmem [shape: f32[1,128], index: 5, kind: input, shape index: {}]   ;;  %s1148_s6 = inlined_call_operand.hbm [shape: f32[64,128], index: 6, kind: output, shape index: {}]  }
   0x1   :  { %12 = vsyncpa [#allocation6], 0 }
   0x2   :  { %13 = vsyncpa [#allocation9], 0  ;;  %s32_s23 = sshll.u32 %s1143_s1, 4  ;;  %s33_s23 = int_to_ptr.hbm [resolvable:$true] %s32_s23 }
   0x3   :  { %14 = vsyncpa [#allocation4], 0  ;;  %s849_s24 = smov [#allocation5]   ;;  %s19_s28 = sshll.u32 %s1142_s0, 4  ;;  %s20_s28 = int_to_ptr.hbm [resolvable:$true] %s19_s28 }
   0x4   :  { %s34_s25 = sshll.u32 %s849_s24, 4  ;;  %s850_s29 = smov 64   ;;  %s35_s25 = int_to_ptr.vmem [resolvable:$true] %s34_s25 }
   0x5   :  { %s851_s30 = smov 4   ;;  %s852_s7 = smov [#allocation2]  }
   0x6   :  { %40 = dma.hbm_to_vmem [thread:$0]  %s33_s23, 512, %s35_s25, [#allocation6], %s850_s29, %s850_s29, %s851_s30  }
   0x7   :  { %s21_s8 = sshll.u32 %s852_s7, 4  ;;  %s853_s9 = smov 128   ;;  %s22_s8 = int_to_ptr.vmem [resolvable:$true] %s21_s8 }
   0x8   :  { %s854_s10 = smov 8   ;;  %s45_s12 = sshll.u32 %s1144_s2, 4  ;;  %s46_s12 = int_to_ptr.hbm [resolvable:$true] %s45_s12 }
   0x9   :  { %27 = dma.hbm_to_vmem [thread:$0]  %s20_s28, 1024, %s22_s8, [#allocation3], %s853_s9, %s853_s9, %s854_s10  }
   0xa   :  { %s855_s13 = smov [#allocation7]   ;;  %s60_s16 = sshll.u32 %s1146_s4, 4  ;;  %s61_s16 = int_to_ptr.hbm [resolvable:$true] %s60_s16 }
   0xb   :  { %s47_s0 = sshll.u32 %s855_s13, 4  ;;  %s856_s17 = smov [#allocation8]   ;;  %s48_s0 = int_to_ptr.vmem [resolvable:$true] %s47_s0 }
   0xc   :  { %53 = dma.hbm_to_vmem [thread:$0]  %s46_s12, 2048, %s48_s0, [#allocation6], %s853_s9, %s853_s9, %s854_s10  }
   0xd   :  { %s62_s18 = sshll.u32 %s856_s17, 4  ;;  %s63_s18 = int_to_ptr.vmem [resolvable:$true] %s62_s18 }
   0xe   :  { %68 = dma.hbm_to_vmem [thread:$0]  %s61_s16, 2048, %s63_s18, [#allocation9], %s853_s9, %s853_s9, %s854_s10  }
   0xf   :  { %841 = dma.done.wait [#allocation3], 1024  }
  0x10   :  { %842 = vsyncadd [#allocation3], 4294966272 }
  0x11   :  { %843 = dma.done.wait [#allocation6], 2560  }
  0x12   :  { %844 = vsyncadd [#allocation6], 4294964736 }
  0x13   :  { %845 = dma.done.wait [#allocation9], 2048  }
  0x14   :  { %846 = vsyncadd [#allocation9], 4294965248  ;;  %v111_v0 = vld [vmem:[#allocation7 + $0x78] sm:$0xff]  ;;  %v110_v1 = vld [vmem:[#allocation7 + $0x70] sm:$0xff]  ;;  %vm266_vm0 = vcmask 523264   ;;  %s635_s23 = sshll.u32 %s1148_s6, 4  ;;  %s636_s23 = int_to_ptr.hbm [resolvable:$true] %s635_s23 }
  0x15   :  { %116 = vmatpush.msra.mxu0 %v111_v0  ;;  %v109_v2 = vld [vmem:[#allocation7 + $0x68] sm:$0xff]  ;;  %v108_v3 = vld [vmem:[#allocation7 + $0x60] sm:$0xff]  ;;  %v107_v4 = vld [vmem:[#allocation7 + $0x58] sm:$0xff] }
  0x16   :  { %v106_v5 = vld [vmem:[#allocation7 + $0x50] sm:$0xff]  ;;  %v105_v6 = vld [vmem:[#allocation7 + $0x48] sm:$0xff]  ;;  %v104_v7 = vld [vmem:[#allocation7 + $0x40] sm:$0xff] }
  0x17   :  { %117 = vmatpush.msra.mxu0 %v110_v1  ;;  %v103_v8 = vld [vmem:[#allocation7 + $0x38] sm:$0xff]  ;;  %v102_v9 = vld [vmem:[#allocation7 + $0x30] sm:$0xff]  ;;  %v101_v10 = vld [vmem:[#allocation7 + $0x28] sm:$0xff] }
  0x18   :  { %v100_v11 = vld [vmem:[#allocation7 + $0x20] sm:$0xff]  ;;  %v99_v12 = vld [vmem:[#allocation7 + $0x18] sm:$0xff]  ;;  %v98_v13 = vld [vmem:[#allocation7 + $0x10] sm:$0xff] }
  0x19   :  { %118 = vmatpush.msra.mxu0 %v109_v2  ;;  %v97_v14 = vld [vmem:[#allocation7 + $0x8] sm:$0xff]  ;;  %v96_v15 = vld [vmem:[#allocation7] sm:$0xff]  ;;  %v920_v18 = vld [vmem:[#allocation2 + $0x10] sm:$0xff] }
  0x1a   :  { %v914_v16 = vld [vmem:[#allocation2] sm:$0xff]  ;;  %v917_v17 = vld [vmem:[#allocation2 + $0x8] sm:$0xff]  ;;  %v923_v19 = vld [vmem:[#allocation2 + $0x18] sm:$0xff] }
  0x1b   :  { %119 = vmatpush.msra.mxu0 %v108_v3  ;;  %v180_v20 = vld [vmem:[#allocation8 + $0x78] sm:$0xff]  ;;  %v179_v21 = vld [vmem:[#allocation8 + $0x70] sm:$0xff]  ;;  %v178_v22 = vld [vmem:[#allocation8 + $0x68] sm:$0xff] }
  0x1c   :  { %185 = vmatpush.msra.mxu1 %v180_v20  ;;  %v177_v23 = vld [vmem:[#allocation8 + $0x60] sm:$0xff]  ;;  %v176_v25 = vld [vmem:[#allocation8 + $0x58] sm:$0xff]  ;;  %v175_v26 = vld [vmem:[#allocation8 + $0x50] sm:$0xff] }
  0x1d   :  { %120 = vmatpush.msra.mxu0 %v107_v4  ;;  %v926_v24 = vld [vmem:[#allocation2 + $0x20] sm:$0xff]  ;;  %v174_v27 = vld [vmem:[#allocation8 + $0x48] sm:$0xff]  ;;  %v172_v30 = vld [vmem:[#allocation8 + $0x38] sm:$0xff] }
  0x1e   :  { %186 = vmatpush.msra.mxu1 %v179_v21  ;;  %v173_v28 = vld [vmem:[#allocation8 + $0x40] sm:$0xff]  ;;  %v929_v29 = vld [vmem:[#allocation2 + $0x28] sm:$0xff]  ;;  %v171_v31 = vld [vmem:[#allocation8 + $0x30] sm:$0xff] }
  0x1f   :  { %121 = vmatpush.msra.mxu0 %v106_v5  ;;  %v170_v32 = vld [vmem:[#allocation8 + $0x28] sm:$0xff]  ;;  %v169_v33 = vld [vmem:[#allocation8 + $0x20] sm:$0xff]  ;;  %v932_v34 = vld [vmem:[#allocation2 + $0x30] sm:$0xff] }
  0x20   :  { %187 = vmatpush.msra.mxu1 %v178_v22  ;;  %v168_v35 = vld [vmem:[#allocation8 + $0x18] sm:$0xff]  ;;  %v167_v37 = vld [vmem:[#allocation8 + $0x10] sm:$0xff]  ;;  %v166_v38 = vld [vmem:[#allocation8 + $0x8] sm:$0xff] }
  0x21   :  { %122 = vmatpush.msra.mxu0 %v105_v6  ;;  %v935_v36 = vld [vmem:[#allocation2 + $0x38] sm:$0xff]  ;;  %v165_v39 = vld [vmem:[#allocation8] sm:$0xff] }
  0x22   :  { %188 = vmatpush.msra.mxu1 %v177_v23  ;;  %v719_v40 = vld [vmem:[%s1145_s3] ss:$0 sm:$0xff] }
  0x23   :  { %123 = vmatpush.msra.mxu0 %v104_v7 }
  0x24   :  { %189 = vmatpush.msra.mxu1 %v176_v25 }
  0x25   :  { %124 = vmatpush.msra.mxu0 %v103_v8  ;;  %v720_v8 = vld [vmem:[%s1147_s5] ss:$0 sm:$0xff]  ;;  %s857_s5 = smov [#allocation10]  }
  0x26   :  { %190 = vmatpush.msra.mxu1 %v175_v26  ;;  %s633_s20 = sshll.u32 %s857_s5, 4  ;;  %s634_s20 = int_to_ptr.vmem [resolvable:$true] %s633_s20 }
  0x27   :  { %125 = vmatpush.msra.mxu0 %v102_v9 }
  0x28   :  { %191 = vmatpush.msra.mxu1 %v174_v27  ;;  %v944_v27 = vld [vmem:[#allocation5] sm:$0xff] }
  0x29   :  { %126 = vmatpush.msra.mxu0 %v101_v10 }
  0x2a   :  { %192 = vmatpush.msra.mxu1 %v173_v28  ;;  %v948_v28 = vld [vmem:[#allocation5 + $0x8] sm:$0xff] }
  0x2b   :  { %127 = vmatpush.msra.mxu0 %v100_v11 }
  0x2c   :  { %193 = vmatpush.msra.mxu1 %v172_v30  ;;  %v952_v30 = vld [vmem:[#allocation5 + $0x10] sm:$0xff] }
  0x2d   :  { %128 = vmatpush.msra.mxu0 %v99_v12 }
  0x2e   :  { %194 = vmatpush.msra.mxu1 %v171_v31  ;;  %v956_v31 = vld [vmem:[#allocation5 + $0x18] sm:$0xff] }
  0x2f   :  { %129 = vmatpush.msra.mxu0 %v98_v13 }
  0x30   :  { %195 = vmatpush.msra.mxu1 %v170_v32 }
  0x31   :  { %130 = vmatpush.msra.mxu0 %v97_v14 }
  0x32   :  { %196 = vmatpush.msra.mxu1 %v169_v33 }
  0x33   :  { %131 = vmatpush.msra.mxu0 %v96_v15 }
  0x34   :  { %132 = vmatmul.f32.vlgmr.msra.gmra.mxu0 %v914_v16  ;;  %197 = vmatpush.msra.mxu1 %v168_v35 }
  0x36   :  { %198 = vmatpush.msra.mxu1 %v167_v37 }
  0x38   :  { %199 = vmatpush.msra.mxu1 %v166_v38 }
  0x3a   :  { %200 = vmatpush.msra.mxu1 %v165_v39 }
  0x3c   :  { %135 = vmatmul.f32.gmra.mxu0 %v917_v17 }
  0x44   :  { %138 = vmatmul.f32.gmra.mxu0 %v920_v18 }
  0x4c   :  { %141 = vmatmul.f32.gmra.mxu0 %v923_v19 }
  0x54   :  { %144 = vmatmul.f32.gmra.mxu0 %v926_v24 }
  0x5c   :  { %147 = vmatmul.f32.gmra.mxu0 %v929_v29 }
  0x64   :  { %150 = vmatmul.f32.gmra.mxu0 %v932_v34 }
  0x6c   :  { %153 = vmatmul.f32.gmra.mxu0 %v935_v36 }
  0xb1   :  { %v133_v41 = vpop.f32.mrf.mxu0 }
  0xb2   :  { %v134_v42 = vadd.f32 %v719_v40, %v133_v41 }
  0xb4   :  { %v157_v43 = vmax.f32 %v134_v42, 0.0 }
  0xb6   :  { %201 = vmatmul.f32.vlgmr.msra.gmra.mxu1 %v157_v43 }
  0xb9   :  { %v136_v44 = vpop.f32.mrf.mxu0 }
  0xba   :  { %v137_v45 = vadd.f32 %v719_v40, %v136_v44 }
  0xbc   :  { %v158_v46 = vmax.f32 %v137_v45, 0.0 }
  0xbe   :  { %204 = vmatmul.f32.gmra.mxu1 %v158_v46 }
  0xc1   :  { %v139_v47 = vpop.f32.mrf.mxu0 }
  0xc2   :  { %v140_v48 = vadd.f32 %v719_v40, %v139_v47 }
  0xc4   :  { %v159_v49 = vmax.f32 %v140_v48, 0.0 }
  0xc6   :  { %207 = vmatmul.f32.gmra.mxu1 %v159_v49 }
  0xc9   :  { %v142_v50 = vpop.f32.mrf.mxu0 }
  0xca   :  { %v143_v51 = vadd.f32 %v719_v40, %v142_v50 }
  0xcc   :  { %v160_v52 = vmax.f32 %v143_v51, 0.0 }
  0xce   :  { %210 = vmatmul.f32.gmra.mxu1 %v160_v52 }
  0xd1   :  { %v145_v53 = vpop.f32.mrf.mxu0 }
  0xd2   :  { %v146_v54 = vadd.f32 %v719_v40, %v145_v53 }
  0xd4   :  { %v161_v55 = vmax.f32 %v146_v54, 0.0 }
  0xd6   :  { %213 = vmatmul.f32.gmra.mxu1 %v161_v55 }
  0xd9   :  { %v148_v56 = vpop.f32.mrf.mxu0 }
  0xda   :  { %v149_v57 = vadd.f32 %v719_v40, %v148_v56 }
  0xdc   :  { %v162_v58 = vmax.f32 %v149_v57, 0.0 }
  0xde   :  { %216 = vmatmul.f32.gmra.mxu1 %v162_v58 }
  0xe1   :  { %v151_v59 = vpop.f32.mrf.mxu0 }
  0xe2   :  { %v152_v60 = vadd.f32 %v719_v40, %v151_v59 }
  0xe4   :  { %v163_v61 = vmax.f32 %v152_v60, 0.0 }
  0xe6   :  { %219 = vmatmul.f32.gmra.mxu1 %v163_v61 }
  0xe9   :  { %v154_v62 = vpop.f32.mrf.mxu0 }
  0xea   :  { %v155_v63 = vadd.f32 %v719_v40, %v154_v62 }
  0xec   :  { %v164_v0 = vmax.f32 %v155_v63, 0.0 }
  0xee   :  { %222 = vmatmul.f32.gmra.mxu1 %v164_v0 }
 0x133   :  { %v202_v1 = vpop.f32.mrf.mxu1 }
 0x134   :  { %v203_v25 = vadd.f32 %v720_v8, %v202_v1 }
 0x136   :  { %v980_v57 = vmul.f32 0.1, %v203_v25 }
 0x13b   :  { %v205_v2 = vpop.f32.mrf.mxu1 }
 0x13c   :  { %v206_v22 = vadd.f32 %v720_v8, %v205_v2 }
 0x13e   :  { %v242_v26 = vpack.c.bf16 %v206_v22, %v203_v25  ;;  %v977_v55 = vmul.f32 0.1, %v206_v22 }
 0x143   :  { %v208_v3 = vpop.f32.mrf.mxu1 }
 0x144   :  { %v209_v21 = vadd.f32 %v720_v8, %v208_v3 }
 0x146   :  { %v974_v52 = vmul.f32 0.1, %v209_v21 }
 0x14b   :  { %v211_v4 = vpop.f32.mrf.mxu1 }
 0x14c   :  { %v212_v15 = vadd.f32 %v720_v8, %v211_v4 }
 0x14e   :  { %v243_v23 = vpack.c.bf16 %v212_v15, %v209_v21  ;;  %v971_v50 = vmul.f32 0.1, %v212_v15 }
 0x153   :  { %v214_v5 = vpop.f32.mrf.mxu1 }
 0x154   :  { %v215_v14 = vadd.f32 %v720_v8, %v214_v5 }
 0x156   :  { %v968_v47 = vmul.f32 0.1, %v215_v14 }
 0x15b   :  { %v217_v6 = vpop.f32.mrf.mxu1 }
 0x15c   :  { %v218_v12 = vadd.f32 %v720_v8, %v217_v6 }
 0x15e   :  { %v244_v20 = vpack.c.bf16 %v218_v12, %v215_v14  ;;  %v964_v44 = vmul.f32 0.1, %v218_v12 }
 0x163   :  { %v220_v7 = vpop.f32.mrf.mxu1 }
 0x164   :  { %v221_v10 = vadd.f32 %v720_v8, %v220_v7 }
 0x166   :  { %v960_v41 = vmul.f32 0.1, %v221_v10 }
 0x16b   :  { %v223_v9 = vpop.f32.mrf.mxu1 }
 0x16c   :  { %v224_v11 = vadd.f32 %v720_v8, %v223_v9 }
 0x16e   :  { %v245_v13 = vpack.c.bf16 %v224_v11, %v221_v10  ;;  %v962_v42 = vmul.f32 0.1, %v224_v11 }
 0x170   :  { %283 = vmatpush.bf16.msra.mxu2 %v245_v13 }
 0x174   :  { %284 = vmatpush.bf16.msra.mxu2 %v244_v20 }
 0x178   :  { %285 = vmatpush.bf16.msra.mxu2 %v243_v23 }
 0x17c   :  { %286 = vmatpush.bf16.msra.mxu2 %v242_v26 }
 0x17f   :  { %666 = vmatmul.msk.bf16.vlgmr.msra.gmra.mxu2 %vm266_vm0, %v944_v27 }
 0x18f   :  { %667 = vmatmul.msk.bf16.gmra.mxu2 %vm266_vm0, %v948_v28 }
 0x19f   :  { %668 = vmatmul.msk.bf16.gmra.mxu2 %vm266_vm0, %v952_v30 }
 0x1af   :  { %669 = vmatmul.msk.bf16.gmra.mxu2 %vm266_vm0, %v956_v31 }
 0x202   :  { %v288_v32 = vpop.f32.mrf.mxu2 }
 0x203   :  { %v289_v60 = vadd.f32 %v288_v32, %v980_v57 }
 0x20a   :  { %v290_v33 = vpop.f32.mrf.mxu2 }
 0x20b   :  { %v291_v58 = vadd.f32 %v290_v33, %v977_v55 }
 0x20d   :  { %v308_v61 = vpack.c.bf16 %v291_v58, %v289_v60 }
 0x212   :  { %v293_v35 = vpop.f32.mrf.mxu2 }
 0x213   :  { %v294_v56 = vadd.f32 %v293_v35, %v974_v52 }
 0x21a   :  { %v295_v37 = vpop.f32.mrf.mxu2 }
 0x21b   :  { %v296_v53 = vadd.f32 %v295_v37, %v971_v50 }
 0x21d   :  { %v309_v59 = vpack.c.bf16 %v296_v53, %v294_v56 }
 0x222   :  { %v298_v38 = vpop.f32.mrf.mxu2 }
 0x223   :  { %v299_v51 = vadd.f32 %v298_v38, %v968_v47 }
 0x22a   :  { %v300_v39 = vpop.f32.mrf.mxu2 }
 0x22b   :  { %v301_v48 = vadd.f32 %v300_v39, %v964_v44 }
 0x22d   :  { %v310_v54 = vpack.c.bf16 %v301_v48, %v299_v51 }
 0x232   :  { %v303_v40 = vpop.f32.mrf.mxu2 }
 0x233   :  { %v304_v45 = vadd.f32 %v303_v40, %v960_v41 }
 0x23a   :  { %v305_v43 = vpop.f32.mrf.mxu2 }
 0x23b   :  { %v306_v46 = vadd.f32 %v305_v43, %v962_v42 }
 0x23d   :  { %v311_v49 = vpack.c.bf16 %v306_v46, %v304_v45 }
 0x23f   :  { %316 = vmatpush.bf16.msra.mxu3 %v311_v49 }
 0x243   :  { %317 = vmatpush.bf16.msra.mxu3 %v310_v54 }
 0x247   :  { %318 = vmatpush.bf16.msra.mxu3 %v309_v59 }
 0x24b   :  { %319 = vmatpush.bf16.msra.mxu3 %v308_v61 }
 0x24e   :  { %670 = vmatmul.msk.bf16.vlgmr.msra.gmra.mxu3 %vm266_vm0, %v944_v27 }
 0x25e   :  { %671 = vmatmul.msk.bf16.gmra.mxu3 %vm266_vm0, %v948_v28 }
 0x26e   :  { %672 = vmatmul.msk.bf16.gmra.mxu3 %vm266_vm0, %v952_v30 }
 0x27e   :  { %673 = vmatmul.msk.bf16.gmra.mxu3 %vm266_vm0, %v956_v31 }
 0x2d1   :  { %v321_v62 = vpop.f32.mrf.mxu3 }
 0x2d2   :  { %v322_v20 = vadd.f32 %v321_v62, %v980_v57 }
 0x2d9   :  { %v323_v63 = vpop.f32.mrf.mxu3 }
 0x2da   :  { %v324_v14 = vadd.f32 %v323_v63, %v977_v55 }
 0x2dc   :  { %v341_v21 = vpack.c.bf16 %v324_v14, %v322_v20 }
 0x2e1   :  { %v326_v0 = vpop.f32.mrf.mxu3 }
 0x2e2   :  { %v327_v13 = vadd.f32 %v326_v0, %v974_v52 }
 0x2e9   :  { %v328_v1 = vpop.f32.mrf.mxu3 }
 0x2ea   :  { %v329_v11 = vadd.f32 %v328_v1, %v971_v50 }
 0x2ec   :  { %v342_v15 = vpack.c.bf16 %v329_v11, %v327_v13 }
 0x2f1   :  { %v331_v2 = vpop.f32.mrf.mxu3 }
 0x2f2   :  { %v332_v10 = vadd.f32 %v331_v2, %v968_v47 }
 0x2f9   :  { %v333_v3 = vpop.f32.mrf.mxu3 }
 0x2fa   :  { %v334_v8 = vadd.f32 %v333_v3, %v964_v44 }
 0x2fc   :  { %v343_v12 = vpack.c.bf16 %v334_v8, %v332_v10 }
 0x301   :  { %v336_v4 = vpop.f32.mrf.mxu3 }
 0x302   :  { %v337_v6 = vadd.f32 %v336_v4, %v960_v41 }
 0x309   :  { %v338_v5 = vpop.f32.mrf.mxu3 }
 0x30a   :  { %v339_v7 = vadd.f32 %v338_v5, %v962_v42 }
 0x30c   :  { %v344_v9 = vpack.c.bf16 %v339_v7, %v337_v6 }
 0x30e   :  { %349 = vmatpush.bf16.msrb.mxu2 %v344_v9 }
 0x312   :  { %350 = vmatpush.bf16.msrb.mxu2 %v343_v12 }
 0x316   :  { %351 = vmatpush.bf16.msrb.mxu2 %v342_v15 }
 0x31a   :  { %352 = vmatpush.bf16.msrb.mxu2 %v341_v21 }
 0x31d   :  { %674 = vmatmul.msk.bf16.vlgmr.msrb.gmra.mxu2 %vm266_vm0, %v944_v27 }
 0x32d   :  { %675 = vmatmul.msk.bf16.gmra.mxu2 %vm266_vm0, %v948_v28 }
 0x33d   :  { %676 = vmatmul.msk.bf16.gmra.mxu2 %vm266_vm0, %v952_v30 }
 0x34d   :  { %677 = vmatmul.msk.bf16.gmra.mxu2 %vm266_vm0, %v956_v31 }
 0x3a0   :  { %v354_v22 = vpop.f32.mrf.mxu2 }
 0x3a1   :  { %v355_v54 = vadd.f32 %v354_v22, %v980_v57 }
 0x3a8   :  { %v356_v23 = vpop.f32.mrf.mxu2 }
 0x3a9   :  { %v357_v51 = vadd.f32 %v356_v23, %v977_v55 }
 0x3ab   :  { %v374_v56 = vpack.c.bf16 %v357_v51, %v355_v54 }
 0x3b0   :  { %v359_v25 = vpop.f32.mrf.mxu2 }
 0x3b1   :  { %v360_v49 = vadd.f32 %v359_v25, %v974_v52 }
 0x3b8   :  { %v361_v26 = vpop.f32.mrf.mxu2 }
 0x3b9   :  { %v362_v46 = vadd.f32 %v361_v26, %v971_v50 }
 0x3bb   :  { %v375_v53 = vpack.c.bf16 %v362_v46, %v360_v49 }
 0x3c0   :  { %v364_v32 = vpop.f32.mrf.mxu2 }
 0x3c1   :  { %v365_v45 = vadd.f32 %v364_v32, %v968_v47 }
 0x3c8   :  { %v366_v33 = vpop.f32.mrf.mxu2 }
 0x3c9   :  { %v367_v40 = vadd.f32 %v366_v33, %v964_v44 }
 0x3cb   :  { %v376_v48 = vpack.c.bf16 %v367_v40, %v365_v45 }
 0x3d0   :  { %v369_v35 = vpop.f32.mrf.mxu2 }
 0x3d1   :  { %v370_v38 = vadd.f32 %v369_v35, %v960_v41 }
 0x3d8   :  { %v371_v37 = vpop.f32.mrf.mxu2 }
 0x3d9   :  { %v372_v39 = vadd.f32 %v371_v37, %v962_v42 }
 0x3db   :  { %v377_v43 = vpack.c.bf16 %v372_v39, %v370_v38 }
 0x3dd   :  { %382 = vmatpush.bf16.msrb.mxu3 %v377_v43 }
 0x3e1   :  { %383 = vmatpush.bf16.msrb.mxu3 %v376_v48 }
 0x3e5   :  { %384 = vmatpush.bf16.msrb.mxu3 %v375_v53 }
 0x3e9   :  { %385 = vmatpush.bf16.msrb.mxu3 %v374_v56 }
 0x3ec   :  { %678 = vmatmul.msk.bf16.vlgmr.msrb.gmra.mxu3 %vm266_vm0, %v944_v27 }
 0x3fc   :  { %679 = vmatmul.msk.bf16.gmra.mxu3 %vm266_vm0, %v948_v28 }
 0x40c   :  { %680 = vmatmul.msk.bf16.gmra.mxu3 %vm266_vm0, %v952_v30 }
 0x41c   :  { %681 = vmatmul.msk.bf16.gmra.mxu3 %vm266_vm0, %v956_v31 }
 0x46f   :  { %v387_v58 = vpop.f32.mrf.mxu3 }
 0x470   :  { %v388_v12 = vadd.f32 %v387_v58, %v980_v57 }
 0x477   :  { %v389_v59 = vpop.f32.mrf.mxu3 }
 0x478   :  { %v390_v10 = vadd.f32 %v389_v59, %v977_v55 }
 0x47a   :  { %v407_v13 = vpack.c.bf16 %v390_v10, %v388_v12 }
 0x47f   :  { %v392_v60 = vpop.f32.mrf.mxu3 }
 0x480   :  { %v393_v9 = vadd.f32 %v392_v60, %v974_v52 }
 0x487   :  { %v394_v61 = vpop.f32.mrf.mxu3 }
 0x488   :  { %v395_v7 = vadd.f32 %v394_v61, %v971_v50 }
 0x48a   :  { %v408_v11 = vpack.c.bf16 %v395_v7, %v393_v9 }
 0x48f   :  { %v397_v62 = vpop.f32.mrf.mxu3 }
 0x490   :  { %v398_v6 = vadd.f32 %v397_v62, %v968_v47 }
 0x497   :  { %v399_v63 = vpop.f32.mrf.mxu3 }
 0x498   :  { %v400_v4 = vadd.f32 %v399_v63, %v964_v44 }
 0x49a   :  { %v409_v8 = vpack.c.bf16 %v400_v4, %v398_v6 }
 0x49f   :  { %v402_v0 = vpop.f32.mrf.mxu3 }
 0x4a0   :  { %v403_v2 = vadd.f32 %v402_v0, %v960_v41 }
 0x4a7   :  { %v404_v1 = vpop.f32.mrf.mxu3 }
 0x4a8   :  { %v405_v3 = vadd.f32 %v404_v1, %v962_v42 }
 0x4aa   :  { %v410_v5 = vpack.c.bf16 %v405_v3, %v403_v2 }
 0x4ac   :  { %415 = vmatpush.bf16.msrb.mxu0 %v410_v5 }
 0x4b0   :  { %416 = vmatpush.bf16.msrb.mxu0 %v409_v8 }
 0x4b4   :  { %417 = vmatpush.bf16.msrb.mxu0 %v408_v11 }
 0x4b8   :  { %418 = vmatpush.bf16.msrb.mxu0 %v407_v13 }
 0x4bb   :  { %682 = vmatmul.msk.bf16.vlgmr.msrb.gmra.mxu0 %vm266_vm0, %v944_v27 }
 0x4cb   :  { %683 = vmatmul.msk.bf16.gmra.mxu0 %vm266_vm0, %v948_v28 }
 0x4db   :  { %684 = vmatmul.msk.bf16.gmra.mxu0 %vm266_vm0, %v952_v30 }
 0x4eb   :  { %685 = vmatmul.msk.bf16.gmra.mxu0 %vm266_vm0, %v956_v31 }
 0x538   :  { %v420_v14 = vpop.f32.mrf.mxu0 }
 0x539   :  { %v421_v48 = vadd.f32 %v420_v14, %v980_v57 }
 0x540   :  { %v422_v15 = vpop.f32.mrf.mxu0 }
 0x541   :  { %v423_v45 = vadd.f32 %v422_v15, %v977_v55 }
 0x543   :  { %v440_v49 = vpack.c.bf16 %v423_v45, %v421_v48 }
 0x548   :  { %v425_v20 = vpop.f32.mrf.mxu0 }
 0x549   :  { %v426_v43 = vadd.f32 %v425_v20, %v974_v52 }
 0x550   :  { %v427_v21 = vpop.f32.mrf.mxu0 }
 0x551   :  { %v428_v39 = vadd.f32 %v427_v21, %v971_v50 }
 0x553   :  { %v441_v46 = vpack.c.bf16 %v428_v39, %v426_v43 }
 0x558   :  { %v430_v22 = vpop.f32.mrf.mxu0 }
 0x559   :  { %v431_v38 = vadd.f32 %v430_v22, %v968_v47 }
 0x560   :  { %v432_v23 = vpop.f32.mrf.mxu0 }
 0x561   :  { %v433_v35 = vadd.f32 %v432_v23, %v964_v44 }
 0x563   :  { %v442_v40 = vpack.c.bf16 %v433_v35, %v431_v38 }
 0x568   :  { %v435_v25 = vpop.f32.mrf.mxu0 }
 0x569   :  { %v436_v32 = vadd.f32 %v435_v25, %v960_v41 }
 0x570   :  { %v437_v26 = vpop.f32.mrf.mxu0 }
 0x571   :  { %v438_v33 = vadd.f32 %v437_v26, %v962_v42 }
 0x573   :  { %v443_v37 = vpack.c.bf16 %v438_v33, %v436_v32 }
 0x575   :  { %448 = vmatpush.bf16.msrb.mxu1 %v443_v37 }
 0x579   :  { %449 = vmatpush.bf16.msrb.mxu1 %v442_v40 }
 0x57d   :  { %450 = vmatpush.bf16.msrb.mxu1 %v441_v46 }
 0x581   :  { %451 = vmatpush.bf16.msrb.mxu1 %v440_v49 }
 0x584   :  { %686 = vmatmul.msk.bf16.vlgmr.msrb.gmra.mxu1 %vm266_vm0, %v944_v27 }
 0x594   :  { %687 = vmatmul.msk.bf16.gmra.mxu1 %vm266_vm0, %v948_v28 }
 0x5a4   :  { %688 = vmatmul.msk.bf16.gmra.mxu1 %vm266_vm0, %v952_v30 }
 0x5b4   :  { %689 = vmatmul.msk.bf16.gmra.mxu1 %vm266_vm0, %v956_v31 }
 0x601   :  { %v453_v51 = vpop.f32.mrf.mxu1 }
 0x602   :  { %v454_v8 = vadd.f32 %v453_v51, %v980_v57 }
 0x609   :  { %v455_v53 = vpop.f32.mrf.mxu1 }
 0x60a   :  { %v456_v6 = vadd.f32 %v455_v53, %v977_v55 }
 0x60c   :  { %v473_v9 = vpack.c.bf16 %v456_v6, %v454_v8 }
 0x611   :  { %v458_v54 = vpop.f32.mrf.mxu1 }
 0x612   :  { %v459_v5 = vadd.f32 %v458_v54, %v974_v52 }
 0x619   :  { %v460_v56 = vpop.f32.mrf.mxu1 }
 0x61a   :  { %v461_v3 = vadd.f32 %v460_v56, %v971_v50 }
 0x61c   :  { %v474_v7 = vpack.c.bf16 %v461_v3, %v459_v5 }
 0x621   :  { %v463_v58 = vpop.f32.mrf.mxu1 }
 0x622   :  { %v464_v2 = vadd.f32 %v463_v58, %v968_v47 }
 0x629   :  { %v465_v59 = vpop.f32.mrf.mxu1 }
 0x62a   :  { %v466_v0 = vadd.f32 %v465_v59, %v964_v44 }
 0x62c   :  { %v475_v4 = vpack.c.bf16 %v466_v0, %v464_v2 }
 0x631   :  { %v468_v60 = vpop.f32.mrf.mxu1 }
 0x632   :  { %v469_v62 = vadd.f32 %v468_v60, %v960_v41 }
 0x639   :  { %v470_v61 = vpop.f32.mrf.mxu1 }
 0x63a   :  { %v471_v63 = vadd.f32 %v470_v61, %v962_v42 }
 0x63c   :  { %v476_v1 = vpack.c.bf16 %v471_v63, %v469_v62 }
 0x63e   :  { %481 = vmatpush.bf16.msra.mxu2 %v476_v1 }
 0x642   :  { %482 = vmatpush.bf16.msra.mxu2 %v475_v4 }
 0x646   :  { %483 = vmatpush.bf16.msra.mxu2 %v474_v7 }
 0x64a   :  { %484 = vmatpush.bf16.msra.mxu2 %v473_v9 }
 0x64d   :  { %690 = vmatmul.msk.bf16.vlgmr.msra.gmra.mxu2 %vm266_vm0, %v944_v27 }
 0x65d   :  { %691 = vmatmul.msk.bf16.gmra.mxu2 %vm266_vm0, %v948_v28 }
 0x66d   :  { %692 = vmatmul.msk.bf16.gmra.mxu2 %vm266_vm0, %v952_v30 }
 0x67d   :  { %693 = vmatmul.msk.bf16.gmra.mxu2 %vm266_vm0, %v956_v31 }
 0x6d0   :  { %v486_v10 = vpop.f32.mrf.mxu2 }
 0x6d1   :  { %v487_v40 = vadd.f32 %v486_v10, %v980_v57 }
 0x6d8   :  { %v488_v11 = vpop.f32.mrf.mxu2 }
 0x6d9   :  { %v489_v38 = vadd.f32 %v488_v11, %v977_v55 }
 0x6db   :  { %v506_v43 = vpack.c.bf16 %v489_v38, %v487_v40 }
 0x6e0   :  { %v491_v12 = vpop.f32.mrf.mxu2 }
 0x6e1   :  { %v492_v37 = vadd.f32 %v491_v12, %v974_v52 }
 0x6e8   :  { %v493_v13 = vpop.f32.mrf.mxu2 }
 0x6e9   :  { %v494_v33 = vadd.f32 %v493_v13, %v971_v50 }
 0x6eb   :  { %v507_v39 = vpack.c.bf16 %v494_v33, %v492_v37 }
 0x6f0   :  { %v496_v14 = vpop.f32.mrf.mxu2 }
 0x6f1   :  { %v497_v32 = vadd.f32 %v496_v14, %v968_v47 }
 0x6f8   :  { %v498_v15 = vpop.f32.mrf.mxu2 }
 0x6f9   :  { %v499_v25 = vadd.f32 %v498_v15, %v964_v44 }
 0x6fb   :  { %v508_v35 = vpack.c.bf16 %v499_v25, %v497_v32 }
 0x700   :  { %v501_v20 = vpop.f32.mrf.mxu2 }
 0x701   :  { %v502_v22 = vadd.f32 %v501_v20, %v960_v41 }
 0x708   :  { %v503_v21 = vpop.f32.mrf.mxu2 }
 0x709   :  { %v504_v23 = vadd.f32 %v503_v21, %v962_v42 }
 0x70b   :  { %v509_v26 = vpack.c.bf16 %v504_v23, %v502_v22 }
 0x70d   :  { %514 = vmatpush.bf16.msra.mxu3 %v509_v26 }
 0x711   :  { %515 = vmatpush.bf16.msra.mxu3 %v508_v35 }
 0x715   :  { %516 = vmatpush.bf16.msra.mxu3 %v507_v39 }
 0x719   :  { %517 = vmatpush.bf16.msra.mxu3 %v506_v43 }
 0x71c   :  { %694 = vmatmul.msk.bf16.vlgmr.msra.gmra.mxu3 %vm266_vm0, %v944_v27 }
 0x72c   :  { %695 = vmatmul.msk.bf16.gmra.mxu3 %vm266_vm0, %v948_v28 }
 0x73c   :  { %696 = vmatmul.msk.bf16.gmra.mxu3 %vm266_vm0, %v952_v30 }
 0x74c   :  { %697 = vmatmul.msk.bf16.gmra.mxu3 %vm266_vm0, %v956_v31 }
 0x79f   :  { %v519_v45 = vpop.f32.mrf.mxu3 }
 0x7a0   :  { %v520_v4 = vadd.f32 %v519_v45, %v980_v57 }
 0x7a7   :  { %v521_v46 = vpop.f32.mrf.mxu3 }
 0x7a8   :  { %v522_v2 = vadd.f32 %v521_v46, %v977_v55 }
 0x7aa   :  { %v539_v5 = vpack.c.bf16 %v522_v2, %v520_v4 }
 0x7af   :  { %v524_v48 = vpop.f32.mrf.mxu3 }
 0x7b0   :  { %v525_v1 = vadd.f32 %v524_v48, %v974_v52 }
 0x7b7   :  { %v526_v49 = vpop.f32.mrf.mxu3 }
 0x7b8   :  { %v527_v63 = vadd.f32 %v526_v49, %v971_v50 }
 0x7ba   :  { %v540_v3 = vpack.c.bf16 %v527_v63, %v525_v1 }
 0x7bf   :  { %v529_v51 = vpop.f32.mrf.mxu3 }
 0x7c0   :  { %v530_v62 = vadd.f32 %v529_v51, %v968_v47 }
 0x7c7   :  { %v531_v53 = vpop.f32.mrf.mxu3 }
 0x7c8   :  { %v532_v60 = vadd.f32 %v531_v53, %v964_v44 }
 0x7ca   :  { %v541_v0 = vpack.c.bf16 %v532_v60, %v530_v62 }
 0x7cf   :  { %v534_v54 = vpop.f32.mrf.mxu3 }
 0x7d0   :  { %v535_v58 = vadd.f32 %v534_v54, %v960_v41 }
 0x7d7   :  { %v536_v56 = vpop.f32.mrf.mxu3 }
 0x7d8   :  { %v537_v59 = vadd.f32 %v536_v56, %v962_v42 }
 0x7da   :  { %v542_v61 = vpack.c.bf16 %v537_v59, %v535_v58 }
 0x7dc   :  { %547 = vmatpush.bf16.msra.mxu0 %v542_v61 }
 0x7e0   :  { %548 = vmatpush.bf16.msra.mxu0 %v541_v0 }
 0x7e4   :  { %549 = vmatpush.bf16.msra.mxu0 %v540_v3 }
 0x7e8   :  { %550 = vmatpush.bf16.msra.mxu0 %v539_v5 }
 0x7eb   :  { %698 = vmatmul.msk.bf16.vlgmr.msra.gmra.mxu0 %vm266_vm0, %v944_v27 }
 0x7fb   :  { %699 = vmatmul.msk.bf16.gmra.mxu0 %vm266_vm0, %v948_v28 }
 0x80b   :  { %700 = vmatmul.msk.bf16.gmra.mxu0 %vm266_vm0, %v952_v30 }
 0x81b   :  { %701 = vmatmul.msk.bf16.gmra.mxu0 %vm266_vm0, %v956_v31 }
 0x868   :  { %v552_v6 = vpop.f32.mrf.mxu0 }
 0x869   :  { %v553_v35 = vadd.f32 %v552_v6, %v980_v57 }
 0x870   :  { %v554_v7 = vpop.f32.mrf.mxu0 }
 0x871   :  { %v555_v32 = vadd.f32 %v554_v7, %v977_v55 }
 0x873   :  { %v572_v37 = vpack.c.bf16 %v555_v32, %v553_v35 }
 0x878   :  { %v557_v8 = vpop.f32.mrf.mxu0 }
 0x879   :  { %v558_v26 = vadd.f32 %v557_v8, %v974_v52 }
 0x880   :  { %v559_v9 = vpop.f32.mrf.mxu0 }
 0x881   :  { %v560_v23 = vadd.f32 %v559_v9, %v971_v50 }
 0x883   :  { %v573_v33 = vpack.c.bf16 %v560_v23, %v558_v26 }
 0x888   :  { %v562_v10 = vpop.f32.mrf.mxu0 }
 0x889   :  { %v563_v22 = vadd.f32 %v562_v10, %v968_v47 }
 0x890   :  { %v564_v11 = vpop.f32.mrf.mxu0 }
 0x891   :  { %v565_v20 = vadd.f32 %v564_v11, %v964_v44 }
 0x893   :  { %v574_v25 = vpack.c.bf16 %v565_v20, %v563_v22 }
 0x898   :  { %v567_v12 = vpop.f32.mrf.mxu0 }
 0x899   :  { %v568_v14 = vadd.f32 %v567_v12, %v960_v41 }
 0x8a0   :  { %v569_v13 = vpop.f32.mrf.mxu0 }
 0x8a1   :  { %v570_v15 = vadd.f32 %v569_v13, %v962_v42 }
 0x8a3   :  { %v575_v21 = vpack.c.bf16 %v570_v15, %v568_v14 }
 0x8a5   :  { %580 = vmatpush.bf16.msra.mxu1 %v575_v21 }
 0x8a9   :  { %581 = vmatpush.bf16.msra.mxu1 %v574_v25 }
 0x8ad   :  { %582 = vmatpush.bf16.msra.mxu1 %v573_v33 }
 0x8b1   :  { %583 = vmatpush.bf16.msra.mxu1 %v572_v37 }
 0x8b4   :  { %702 = vmatmul.msk.bf16.vlgmr.msra.gmra.mxu1 %vm266_vm0, %v944_v27 }
 0x8c4   :  { %703 = vmatmul.msk.bf16.gmra.mxu1 %vm266_vm0, %v948_v28 }
 0x8d4   :  { %704 = vmatmul.msk.bf16.gmra.mxu1 %vm266_vm0, %v952_v30 }
 0x8e4   :  { %705 = vmatmul.msk.bf16.gmra.mxu1 %vm266_vm0, %v956_v31 }
 0x931   :  { %v585_v38 = vpop.f32.mrf.mxu1 }
 0x932   :  { %v586_v39 = vadd.f32 %v585_v38, %v980_v57 }
 0x934   :  { %v605_v40 = vmax.f32 %v586_v39, 0.0 }
 0x936   :  { %v613_v43 = vadd.f32 %v605_v40, %v914_v16 }
 0x938   :  { %621 = vst [vmem:[#allocation10] sm:$0xff] %v613_v43 }
 0x939   :  { %v587_v45 = vpop.f32.mrf.mxu1 }
 0x93a   :  { %v588_v46 = vadd.f32 %v587_v45, %v977_v55 }
 0x93c   :  { %v606_v27 = vmax.f32 %v588_v46, 0.0 }
 0x93e   :  { %v614_v48 = vadd.f32 %v606_v27, %v917_v17 }
 0x940   :  { %622 = vst [vmem:[#allocation10 + $0x8] sm:$0xff] %v614_v48 }
 0x941   :  { %v590_v28 = vpop.f32.mrf.mxu1 }
 0x942   :  { %v591_v30 = vadd.f32 %v590_v28, %v974_v52 }
 0x944   :  { %v607_v49 = vmax.f32 %v591_v30, 0.0 }
 0x946   :  { %v615_v31 = vadd.f32 %v607_v49, %v920_v18 }
 0x948   :  { %623 = vst [vmem:[#allocation10 + $0x10] sm:$0xff] %v615_v31 }
 0x949   :  { %v592_v51 = vpop.f32.mrf.mxu1 }
 0x94a   :  { %v593_v57 = vadd.f32 %v592_v51, %v971_v50 }
 0x94c   :  { %v608_v53 = vmax.f32 %v593_v57, 0.0 }
 0x94e   :  { %v616_v16 = vadd.f32 %v608_v53, %v923_v19 }
 0x950   :  { %624 = vst [vmem:[#allocation10 + $0x18] sm:$0xff] %v616_v16 }
 0x951   :  { %v595_v54 = vpop.f32.mrf.mxu1 }
 0x952   :  { %v596_v55 = vadd.f32 %v595_v54, %v968_v47 }
 0x954   :  { %v609_v56 = vmax.f32 %v596_v55, 0.0 }
 0x956   :  { %v617_v17 = vadd.f32 %v609_v56, %v926_v24 }
 0x958   :  { %625 = vst [vmem:[#allocation10 + $0x20] sm:$0xff] %v617_v17 }
 0x959   :  { %v597_v58 = vpop.f32.mrf.mxu1 }
 0x95a   :  { %v598_v52 = vadd.f32 %v597_v58, %v964_v44 }
 0x95c   :  { %v610_v59 = vmax.f32 %v598_v52, 0.0 }
 0x95e   :  { %v618_v18 = vadd.f32 %v610_v59, %v929_v29 }
 0x960   :  { %626 = vst [vmem:[#allocation10 + $0x28] sm:$0xff] %v618_v18 }
 0x961   :  { %v600_v60 = vpop.f32.mrf.mxu1 }
 0x962   :  { %v601_v50 = vadd.f32 %v600_v60, %v960_v41 }
 0x964   :  { %v611_v61 = vmax.f32 %v601_v50, 0.0 }
 0x966   :  { %v619_v19 = vadd.f32 %v611_v61, %v932_v34 }
 0x968   :  { %627 = vst [vmem:[#allocation10 + $0x30] sm:$0xff] %v619_v19 }
 0x969   :  { %v602_v62 = vpop.f32.mrf.mxu1 }
 0x96a   :  { %v603_v47 = vadd.f32 %v602_v62, %v962_v42 }
 0x96c   :  { %v612_v24 = vmax.f32 %v603_v47, 0.0 }
 0x96e   :  { %v620_v29 = vadd.f32 %v612_v24, %v935_v36 }
 0x970   :  { %628 = vst [vmem:[#allocation10 + $0x38] sm:$0xff] %v620_v29 }
 0x971   :  { %641 = dma.vmem_to_hbm [thread:$0]  %s634_s20, 1024, %s636_s23, [#allocation4], %s853_s9, %s853_s9, %s854_s10  }
 0x972   :  { %847 = dma.done.wait [#allocation4], 1024  }
 0x973   :  { %848 = vsyncadd [#allocation4], 4294966272 }
 0x974   :  { %646 = vsyncpa [#allocation3], 1 }
 0x975   :  { %647 = vsyncpa [#allocation6], 1 }
 0x976   :  { %648 = vsyncpa [#allocation9], 1 }
 0x977   :  { %649 = vsyncpa [#allocation4], 1 }

</bundles_post_ra>
